<compile_context>
chip_gen: v5e
topology: v5e:2x2
jax: 0.10.0
libtpu: 0.0.40
codegen_flags: <defaults>
</compile_context>

<pallas_src>
import functools

import jax
import jax.numpy as jnp
from jax.experimental import pallas as pl
from jax.experimental.pallas import tpu as pltpu


def _round_up(x, m):
    return ((x + m - 1) // m) * m


# ----------------------------- Pallas kernel -------------------------------
def _conv_gemm_kernel(x_ref, w_ref, b_ref, o_ref):
    """One lane tile of the fused conv-as-GEMM.

    x_ref : (K, TL)      compute dtype — tap/channel-stacked input columns
    w_ref : (Cout, K)    compute dtype — resident weights (constant index_map)
    b_ref : (Cout, 1)    float32       — resident bias
    o_ref : (Cout, TL)   out dtype     — lane-dense output slab
    """
    acc = jnp.dot(w_ref[...], x_ref[...], preferred_element_type=jnp.float32)
    o_ref[...] = (acc + b_ref[...]).astype(o_ref.dtype)


def _conv_gemm(x_cols, w2d, bias2d, *, lane_tile, out_dtype):
    """x_cols: (K, L) with L a multiple of lane_tile; w2d: (Cout, K)."""
    K, L = x_cols.shape
    Cout, _ = w2d.shape
    grid = (L // lane_tile,)

    flops = 2 * Cout * K * L
    bytes_accessed = (
        x_cols.size * x_cols.dtype.itemsize
        + w2d.size * w2d.dtype.itemsize
        + bias2d.size * 4
        + Cout * L * jnp.dtype(out_dtype).itemsize
    )

    return pl.pallas_call(
        _conv_gemm_kernel,
        out_shape=jax.ShapeDtypeStruct((Cout, L), out_dtype),
        grid_spec=pltpu.PrefetchScalarGridSpec(
            num_scalar_prefetch=0,
            grid=grid,
            in_specs=[
                # lane tile of the stacked columns; K is the full sublane dim
                pl.BlockSpec((K, lane_tile), lambda i: (0, i)),
                # tiny resident blocks (constant index_map)
                pl.BlockSpec((Cout, K), lambda i: (0, 0)),
                pl.BlockSpec((Cout, 1), lambda i: (0, 0)),
            ],
            out_specs=pl.BlockSpec((Cout, lane_tile), lambda i: (0, i)),
        ),
        compiler_params=pltpu.CompilerParams(
            dimension_semantics=("parallel",),
        ),
        cost_estimate=pl.CostEstimate(
            flops=flops, transcendentals=0, bytes_accessed=bytes_accessed
        ),
    )(x_cols, w2d, bias2d)


# ------------------------------ Wrapper (glue) ------------------------------
@functools.partial(
    jax.jit,
    static_argnames=("padding", "compute_dtype", "out_dtype", "max_lane_tile"),
)
def my_conv2d(
    x_nchw,
    weight,
    bias,
    padding=1,
    compute_dtype=jnp.bfloat16,   # explicit precision choice: MXU-native bf16
    out_dtype=jnp.float32,        # f32 = exact accumulations (bf16 is a
                                  # numerics change, opt-in only)
    max_lane_tile=2048,
):
    """Equivalent of MyConv2d.forward (stride=1, dilation=1, groups=1).

    x_nchw : (N, Cin, H, W)
    weight : (Cout, Cin, KH, KW)   (already scaled by init_scale)
    bias   : (Cout,)               (zeros per MyConv2d.__init__)
    returns: (N, Cout, Ho, Wo)     Ho = H + 2*padding - KH + 1, etc.

    NOTE: compute_dtype=bfloat16 rounds activations/weights to bf16 before the
    MXU dot (accumulation stays f32).  Pass compute_dtype=jnp.float32 for
    bit-faithful f32 conv numerics at lower throughput.
    """
    N, Cin, H, W = x_nchw.shape
    Cout, Cin_w, KH, KW = weight.shape
    assert Cin_w == Cin, "groups != 1 not supported"
    p = int(padding)

    Ho, Wo = H + 2 * p - KH + 1, W + 2 * p - KW + 1
    assert Ho > 0 and Wo > 0, "kernel larger than padded input"

    # ---- lightweight im2col: stack taps along the contraction axis ----------
    xpad = jnp.pad(x_nchw, ((0, 0), (0, 0), (p, p), (p, p))).astype(compute_dtype)
    taps = [
        xpad[:, :, kh:kh + Ho, kw:kw + Wo]        # (N, Cin, Ho, Wo) per tap
        for kh in range(KH) for kw in range(KW)
    ]
    K = KH * KW * Cin
    x_cols = jnp.stack(taps, axis=1).reshape(N, K, Ho * Wo)      # (N, K, HoWo)
    # fold batch into the lane (spatial) axis -> (K, N*Ho*Wo)
    x_cols = jnp.transpose(x_cols, (1, 0, 2)).reshape(K, N * Ho * Wo)

    # ---- lane-dense padding + tile choice ------------------------------------
    L = N * Ho * Wo
    Lp = _round_up(L, 128)
    # Prefer >=2 grid steps (v7x has 2 TensorCores) while capping the tile so
    # VMEM stays tiny; on v5e/v6e the extra step costs ~0.35us — negligible.
    lane_tile = min(max_lane_tile, max(128, _round_up(max(Lp // 2, 1), 128)))
    L_tot = _round_up(Lp, lane_tile)
    if L_tot > L:
        x_cols = jnp.pad(x_cols, ((0, 0), (0, L_tot - L)))

    # ---- weights / bias -------------------------------------------------------
    # (Cout, Cin, KH, KW) -> (Cout, KH, KW, Cin) -> (Cout, K), matching the
    # tap-major / channel-minor ordering of x_cols.
    w2d = (
        jnp.transpose(weight, (0, 2, 3, 1)).reshape(Cout, K).astype(compute_dtype)
    )
    bias2d = bias.reshape(Cout, 1).astype(jnp.float32)

    out2d = _conv_gemm(
        x_cols, w2d, bias2d, lane_tile=lane_tile, out_dtype=out_dtype
    )                                                         # (Cout, L_tot)

    out = (
        out2d[:, :L]
        .reshape(Cout, N, Ho, Wo)
        .transpose(1, 0, 2, 3)                                # (N, Cout, Ho, Wo)
    )
    return out.astype(x_nchw.dtype)


# --------------------------------- main -------------------------------------
if __name__ == "__main__":
    # MyConv2d(4, 8, kernel_size=3, padding=1, init_scale=0.5)
    N, Cin, H, W = 2, 4, 16, 16
    Cout, KH, KW = 8, 3, 3
    padding = 1
    init_scale = 0.5

    key = jax.random.PRNGKey(0)
    kx, kw_ = jax.random.split(key)
    x = jax.random.normal(kx, (N, Cin, H, W), dtype=jnp.float32)
    # deterministic synthetic init (PyTorch's exact kaiming-uniform not needed)
    fan_in = Cin * KH * KW
    bound = 1.0 / jnp.sqrt(float(fan_in))
    weight = jax.random.uniform(
        kw_, (Cout, Cin, KH, KW), dtype=jnp.float32, minval=-bound, maxval=bound
    ) * init_scale                                  # weight.mul_(init_scale)
    bias = jnp.zeros((Cout,), dtype=jnp.float32)    # bias.zero_()

    out = my_conv2d(x, weight, bias, padding=padding)
    jax.block_until_ready(out)

    # reference on the same bf16-rounded inputs the kernel consumes
    xr = x.astype(jnp.bfloat16).astype(jnp.float32)
    wr = weight.astype(jnp.bfloat16).astype(jnp.float32)
    ref = jax.lax.conv_general_dilated(
        xr, wr,
        window_strides=(1, 1),
        padding=((padding, padding), (padding, padding)),
        dimension_numbers=("NCHW", "OIHW", "NCHW"),
    ) + bias.reshape(1, Cout, 1, 1)

    assert out.shape == (N, Cout, H, W)
    err = float(jnp.max(jnp.abs(out - ref)))
    assert jnp.allclose(out, ref, atol=2e-3, rtol=2e-3), err

    print("KERNEL_OK")
</pallas_src>

<mosaic_0001>
module attributes {stable_mosaic.version = 11 : i64} {
  func.func @_conv_gemm_kernel(%arg0: i32, %arg1: memref<36x256xbf16, #tpu.memory_space<vmem>>, %arg2: memref<8x36xbf16, #tpu.memory_space<vmem>>, %arg3: memref<8x1xf32, #tpu.memory_space<vmem>>, %arg4: memref<8x256xf32, #tpu.memory_space<vmem>>) attributes {dimension_semantics = [#tpu.dimension_semantics<parallel>], iteration_bounds = array<i64: 2>, scalar_prefetch = 0 : i64, scratch_operands = 0 : i64, tpu.core_type = #tpu.core_type<tc>, window_params = [{transform_indices = @transform_0, window_bounds = array<i64: 36, 256>}, {pipeline_mode = #tpu.pipeline_mode<synchronous>, transform_indices = @transform_1, window_bounds = array<i64: 8, 36>}, {pipeline_mode = #tpu.pipeline_mode<synchronous>, transform_indices = @transform_2, window_bounds = array<i64: 8, 1>}, {transform_indices = @transform_3, window_bounds = array<i64: 8, 256>}]} {
    %c0 = arith.constant 0 : index
    %c0_0 = arith.constant 0 : index
    %0 = vector.load %arg2[%c0, %c0_0] : memref<8x36xbf16, #tpu.memory_space<vmem>>, vector<8x36xbf16>
    %c0_1 = arith.constant 0 : index
    %c0_2 = arith.constant 0 : index
    %1 = vector.load %arg1[%c0_1, %c0_2] : memref<36x256xbf16, #tpu.memory_space<vmem>>, vector<36x256xbf16>
    %cst = arith.constant dense<0.000000e+00> : vector<8x256xf32>
    %2 = tpu.matmul %0, %1, %cst {dimension_numbers = #tpu.dot_dimension_numbers<[1], [0], [0], [1], [0, 0, 1, 1], [], []>} : vector<8x36xbf16>, vector<36x256xbf16>, vector<8x256xf32> -> vector<8x256xf32>
    %c0_3 = arith.constant 0 : index
    %c0_4 = arith.constant 0 : index
    %3 = vector.load %arg3[%c0_3, %c0_4] : memref<8x1xf32, #tpu.memory_space<vmem>>, vector<8x1xf32>
    %4 = vector.broadcast %3 : vector<8x1xf32> to vector<8x256xf32>
    %5 = arith.addf %2, %4 : vector<8x256xf32>
    %c0_5 = arith.constant 0 : index
    %c0_6 = arith.constant 0 : index
    %6 = vector.load %arg4[%c0_5, %c0_6] : memref<8x256xf32, #tpu.memory_space<vmem>>, vector<8x256xf32>
    tpu.vector_store %arg4[%c0_5, %c0_6], %5 {strides = array<i32>} : memref<8x256xf32, #tpu.memory_space<vmem>>, vector<8x256xf32>,
    return
  }
  func.func @transform_0(%arg0: i32) -> (i32, i32) {
    %c0_i32 = arith.constant 0 : i32
    %c0_i32_0 = arith.constant 0 : i32
    return %c0_i32, %arg0 : i32, i32
  }
  func.func @transform_1(%arg0: i32) -> (i32, i32) {
    %c0_i32 = arith.constant 0 : i32
    %c0_i32_0 = arith.constant 0 : i32
    %c0_i32_1 = arith.constant 0 : i32
    return %c0_i32, %c0_i32_0 : i32, i32
  }
  func.func @transform_2(%arg0: i32) -> (i32, i32) {
    %c0_i32 = arith.constant 0 : i32
    %c0_i32_0 = arith.constant 0 : i32
    %c0_i32_1 = arith.constant 0 : i32
    return %c0_i32, %c0_i32_0 : i32, i32
  }
  func.func @transform_3(%arg0: i32) -> (i32, i32) {
    %c0_i32 = arith.constant 0 : i32
    %c0_i32_0 = arith.constant 0 : i32
    return %c0_i32, %arg0 : i32, i32
  }
}

</mosaic_0001>

<bundles_post_ra>
// kernel: my_conv2d.1
= control target key start
LH: loop header
LB: loop body
LE: loop exit
PB: predicated region body
PF: predicated region fallthrough
CT: control target
= control target key end

     0   :  { %s471_s12 = smov 0   ;;  %s473_s13 = smov 0   ;;  %s529_s0 = inlined_call_operand.vmem [shape: bf16[36,512], index: 0, kind: input, shape index: {}]   ;;  %s530_s1 = inlined_call_operand.vmem [shape: bf16[8,36], index: 1, kind: input, shape index: {}]   ;;  %s531_s2 = inlined_call_operand.vmem [shape: f32[8,1], index: 2, kind: input, shape index: {}]   ;;  %s532_s3 = inlined_call_operand.vmem [shape: f32[8,512], index: 3, kind: output, shape index: {}]  }
   0x1   :  { %s475_s14 = smov 0  }
   0x2 LB: > { %s364_s15 = sadd.s32 4294967295, %s448_s14   ;;  %s488_s16 = sadd.s32 1, %s448_s14   ;;  %s448_s14 = sphi %s475_s14, %s535_s14   ;;  %s444_s13 = sphi %s473_s13, %s534_s13   ;;  %s440_s12 = sphi %s471_s12, %s533_s12  }
   0x3   : > { %s17_s17 = ssub.s32 %s448_s14, %s488_s16  ;;  %s20_s18 = sadd.s32 1, %s444_s13 }
   0x4   : > { %p18_p0 = scmp.eq.s32.totalorder %s17_s17, 0  ;;  %p27_p1 = scmp.ne.s32.totalorder %s444_s13, %s440_s12 }
   0x5   : > { %p28_p2 = scmp.eq.s32.totalorder %s448_s14, 0  ;;  %p367_p4 = scmp.ge.s32.totalorder %s448_s14, 2 }
   0x6   : > { %s497_s19 = scalar_select %p18_p0, %s444_s13, %s20_s18  }
   0x7   : > { %p29_p3 = por %p28_p2, %p27_p1  ;;  %127 = sbr.rel (%p367_p4) target bundleno = 21 (0x15), region = 24 }
   0xc   : > { %130 = sbr.rel (!%p29_p3) target bundleno = 21 (0x15), region = 28  ;;  %s132_s20 = sand.u32 (%p29_p3), 1, %s444_s13  }
   0xd   : > { %s393_s21 = sshll.u32 (%p29_p3), %s448_s14, 3  ;;  %s398_s22 = smul.u32 (%p29_p3), 40, %s132_s20 }
   0xe   : > { %s137_s25 = scalar_lea.vmem (%p29_p3), %s529_s0, %s393_s21 }
   0xf   : > { %v174_v0 = vld [vmem:[%s137_s25] sm:$0xff] (%p29_p3)  ;;  %v176_v1 = vld [vmem:[%s137_s25 + $0x10] sm:$0xff] (%p29_p3)  ;;  %s134_s26 = scalar_lea.vmem (%p29_p3), [#allocation2], %s398_s22 }
  0x10   : > { %v178_v2 = vld [vmem:[%s137_s25 + $0x20] sm:$0xff] (%p29_p3)  ;;  %175 = vst [vmem:[%s134_s26] sm:$0xff] (%p29_p3), %v174_v0  ;;  %v180_v3 = vld [vmem:[%s137_s25 + $0x30] sm:$0xff] (%p29_p3) }
  0x11   : > { %177 = vst [vmem:[%s134_s26 + $0x8] sm:$0xff] %v176_v1  ;;  %v182_v4 = vld [vmem:[%s137_s25 + $0x40] sm:$0xff] }
  0x12   : > { %179 = vst [vmem:[%s134_s26 + $0x10] sm:$0xff] %v178_v2 }
  0x13   : > { %181 = vst [vmem:[%s134_s26 + $0x18] sm:$0xff] %v180_v3 }
  0x14   : > { %183 = vst [vmem:[%s134_s26 + $0x20] sm:$0xff] %v182_v4 }
  0x15 PF: > { %p370_p5 = scmp.ge.s32.totalorder %s448_s14, 1  ;;  %p188_p6 = scmp.lt.s32.totalorder %s448_s14, 3 }
  0x17   : > { %p189_p7 = pnand %p370_p5, %p188_p6 }
  0x18   : > { %s195_s27 = sand.u32 (!%p189_p7), 1, %s440_s12   ;;  %s371_s7 = sshll.u32 (!%p189_p7), %s364_s15, 1 }
  0x19   : > { %192 = sbr.rel (%p189_p7) target bundleno = 182 (0xb6), region = 66  ;;  %p220_p8 = scmp.lt.s32.totalorder (!%p189_p7), %s371_s7, 3 }
  0x1a   : > { %s399_s28 = smul.u32 (!%p189_p7), 40, %s195_s27 }
  0x1c   : > { %s197_s4 = scalar_lea.vmem (!%p189_p7), [#allocation2], %s399_s28 }
  0x1e   : > { %v450_v5 = vmov 0   ;;  %v232_v6 = vld [vmem:[%s531_s2] sm:$0xff]  ;;  %vm267_vm0 = vcmask 1041408   ;;  %v383_v10 = vld [vmem:[%s197_s4 + $0x10] sm:$0xf]  ;;  %vm263_vm1 = vcmask 293888  }
  0x1f   : > { %425 = vset.pattern.permute.xlu0 %v450_v5  ;;  %v231_v7 = vld [vmem:[%s197_s4 + $0x20] sm:$0x33]  ;;  %v397_v13 = vld [vmem:[%s197_s4 + $0x14] sm:$0xf0]  ;;  %v396_v14 = vld [vmem:[%s197_s4 + $0x14] sm:$0xf] }
  0x20   : > { %235 = vperm.xlu0 %425, %v232_v6   ;;  %v251_v8 = vunpack.c.l.b16 %v231_v7  ;;  %v252_v9 = vunpack.c.h.b16 %v231_v7  ;;  %v385_v15 = vld [vmem:[%s197_s4 + $0x18] sm:$0xf0]  ;;  %v384_v18 = vor.u32 %v397_v13, %v383_v10  ;;  %v375_v20 = vld [vmem:[%s197_s4] sm:$0xf]  ;;  %v395_v21 = vld [vmem:[%s197_s4 + $0x4] sm:$0xf0] }
  0x21   : > { %v388_v19 = vor.u32 %v396_v14, %v385_v15  ;;  %v394_v22 = vld [vmem:[%s197_s4 + $0x4] sm:$0xf]  ;;  %v377_v23 = vld [vmem:[%s197_s4 + $0x8] sm:$0xf0]  ;;  %v376_v24 = vor.u32 %v395_v21, %v375_v20  ;;  %v226_v26 = vld [vmem:[%s530_s1] sm:$0xf] }
  0x22   : > { %v257_v11 = vpack.c.b16 %v251_v8, %v251_v8  ;;  %v258_v12 = vpack.c.b16 %v252_v9, %v252_v9  ;;  %v380_v25 = vor.u32 %v394_v22, %v377_v23  ;;  %s537_s7 = smov (!%p220_p8, %s371_s7), 3 }
  0x23   : > { %s372_s8 = sshll.u32 %s537_s7, 3 }
  0x24   : > { %v269_v16 = vsel %vm267_vm0, %v257_v11, 0  ;;  %v272_v17 = vsel %vm267_vm0, %v258_v12, 0  ;;  %s223_s11 = scalar_lea.vmem %s532_s3, %s372_s8 }
  0x25   : > { %279 = vmatpush.bf16.msra.mxu0 %v269_v16  ;;  %292 = vmatpush.bf16.msra.mxu1 %v272_v17 }
  0x29   : > { %280 = vmatpush.bf16.msra.mxu0 %v384_v18  ;;  %293 = vmatpush.bf16.msra.mxu1 %v388_v19 }
  0x2d   : > { %281 = vmatpush.bf16.msra.mxu0 %v376_v24  ;;  %294 = vmatpush.bf16.msra.mxu1 %v380_v25 }
  0x30   : > { %389 = vmatmul.msk.bf16.vlgmr.msra.gmra.mxu0 %vm263_vm1, %v226_v26  ;;  %390 = vmatmul.msk.bf16.vlgmr.msra.gmra.mxu1 %vm263_vm1, %v226_v26 }
  0x92   : > { %v236_v27 = vpop.permute.xlu0 %235 }
  0xad   : > { %v283_v28 = vpop.f32.mrf.mxu0  ;;  %v296_v29 = vpop.f32.mrf.mxu1 }
  0xae   : > { %v284_v30 = vadd.f32 %v283_v28, %v236_v27  ;;  %v297_v31 = vadd.f32 %v296_v29, %v236_v27 }
  0xb0   : > { %300 = vst [vmem:[%s223_s11] sm:$0xff] %v284_v30 }
  0xb1   : > { %301 = vst [vmem:[%s223_s11 + $0x8] sm:$0xff] %v297_v31 }
  0xb5   : > { %v285_v32 = vpop.f32.mrf.mxu0  ;;  %v298_v33 = vpop.f32.mrf.mxu1 }
  0xb6 PF: > { %p10_p9 = scmp.ge.s32.totalorder %s488_s16, 4   ;;  %s533_s12 = smov %s444_s13 }
  0xb7   : > { %s534_s13 = smov %s497_s19  ;;  %s535_s14 = smov %s488_s16 }
  0xb8   :  { %12 = sbr.rel (!%p10_p9) target bundleno = 2 (0x2), region = 105 }

</bundles_post_ra>
